<compile_context>
chip_gen: v5e
topology: v5e:2x2
jax: 0.10.0
libtpu: 0.0.40
codegen_flags: <defaults>
</compile_context>

<pallas_src>
import jax
import jax.numpy as jnp
from jax import lax
from jax.experimental import pallas as pl
from jax.experimental.pallas import tpu as pltpu

HIDDEN = 32
INPUT_SIZE = 3
N_CLASSES = 2        # len(['Windows-1252', 'utf-8'])
LAYER_N = 1          # single layer LSTM

XW = 8               # padded input width: [x (3), ones (1), zeros (4)]
NEG_BIG = -1e30      # softmax mask value for padded output lanes


# -----------------------------------------------------------------------------
# Wrapper: single gridless pallas_call for the whole forward pass
# -----------------------------------------------------------------------------
def lstm_module_forward(x_bsi, params_packed, *, hidden=HIDDEN, n_classes=N_CLASSES):
    """Equivalent of LSTM.forward for equal-length sequences.

    Returns:
      log_probs_hn : (batch, n_classes)      -- self.linear(hn[-1])
      out_packed   : (seq*batch, n_classes)  -- self.linear(out.data), time-major
    """
    B, S, I = x_bsi.shape
    H = hidden
    PW = params_packed.shape[1]          # padded lane width (= max(4H, 128) = 128 here)

    # Time-major layout (row = t*B + b) so each recurrence step reads a CONTIGUOUS
    # 8-sublane tile of the projection scratch (no stride-S sublane gather).
    # Tiny transpose (8x8x3 f32) — far cheaper than 8 in-chain strided reads.
    x_tb = jnp.transpose(x_bsi, (1, 0, 2)).reshape(S * B, I)
    x_aug = jnp.concatenate(
        [x_tb,
         jnp.ones((S * B, 1), x_tb.dtype),            # ones column -> folded LSTM bias
         jnp.zeros((S * B, XW - I - 1), x_tb.dtype)],  # pad to XW columns
        axis=1)                                        # (S*B, XW)

    def kernel(x_ref, p_ref, out_ref, xp_sc, hseq_sc):
        # ---- packed parameter slices (all 8-sublane aligned, static, zero-cost) ----
        w_in = p_ref[0:XW, :]                               # (XW, PW)  W_ih^T + bias row
        whh = p_ref[XW:XW + H, :].astype(jnp.bfloat16)      # (H,  PW)  W_hh^T (bf16 MXU)
        wlin = p_ref[XW + H:XW + 2 * H, :]                  # (H,  PW)  head W, zero-padded
        blin = p_ref[XW + 2 * H:XW + 2 * H + 1, :]          # (1,  PW)  head b, -BIG padded

        # ---- (1) Hoisted input projection: one MXU matmul for all time steps. ----
        # Bias already folded via the ones column of x_aug (no broadcast-add).
        xp_sc[...] = jnp.dot(x_ref[...], w_in, preferred_element_type=jnp.float32)

        # ---- (2) Recurrence, fully unrolled (S small & static). ----
        h = jnp.zeros((B, H), jnp.float32)   # h0 = 0
        c = jnp.zeros((B, H), jnp.float32)   # c0 = 0
        for t in range(S):
            # Contiguous time-major tile: rows t*B .. t*B+B-1 (one aligned sublane tile).
            gates = xp_sc[t * B:(t + 1) * B, :] + jnp.dot(
                h.astype(jnp.bfloat16), whh, preferred_element_type=jnp.float32)

            # Two full-vreg activations, then slice the i/f/g/o chunks.
            sig = jax.nn.sigmoid(gates)
            tnh = jnp.tanh(gates)
            i_g = sig[:, 0 * H:1 * H]
            f_g = sig[:, 1 * H:2 * H]
            g_g = tnh[:, 2 * H:3 * H]
            o_g = sig[:, 3 * H:4 * H]

            c = f_g * c + i_g * g_g
            h = o_g * jnp.tanh(c)

            # Time-major packed layout: row = t*B + b.
            hseq_sc[t * B:(t + 1) * B, :] = h

        # ---- (3) Head: Linear + LogSoftmax over the whole packed slab, once. ----
        # Padded lanes: weights are 0 and bias is -BIG, so they drop out of max/logsumexp.
        logits = jnp.dot(hseq_sc[...], wlin, preferred_element_type=jnp.float32) + blin
        m = jnp.max(logits, axis=-1, keepdims=True)
        lse = jnp.log(jnp.sum(jnp.exp(logits - m), axis=-1, keepdims=True)) + m
        out_ref[...] = (logits - lse).astype(out_ref.dtype)   # lane-dense (S*B, PW) store

    out = pl.pallas_call(
        kernel,
        out_shape=jax.ShapeDtypeStruct((S * B, PW), jnp.float32),
        in_specs=[
            pl.BlockSpec((S * B, XW), lambda: (0, 0)),
            pl.BlockSpec(params_packed.shape, lambda: (0, 0)),
        ],
        out_specs=pl.BlockSpec((S * B, PW), lambda: (0, 0)),
        scratch_shapes=[
            pltpu.VMEM((S * B, PW), jnp.float32),   # hoisted input projection (time-major)
            pltpu.VMEM((S * B, H), jnp.float32),    # time-major hidden-state slab
        ],
    )(x_aug, params_packed)

    packed_logp = out[:, :n_classes]          # free XLA slice of the lane-dense slab
    hn_logp = packed_logp[(S - 1) * B:, :]    # linear(hn[-1]) == last B packed rows
    return hn_logp, packed_logp


# -----------------------------------------------------------------------------
# Parameters
# -----------------------------------------------------------------------------
def init_params(key, input_size, hidden, n_classes):
    """PyTorch-layout params, uniform(-1/sqrt(H), 1/sqrt(H))."""
    k = jax.random.split(key, 6)
    s = 1.0 / jnp.sqrt(hidden)
    return dict(
        w_ih=jax.random.uniform(k[0], (4 * hidden, input_size), jnp.float32, -s, s),
        w_hh=jax.random.uniform(k[1], (4 * hidden, hidden), jnp.float32, -s, s),
        b_ih=jax.random.uniform(k[2], (4 * hidden,), jnp.float32, -s, s),
        b_hh=jax.random.uniform(k[3], (4 * hidden,), jnp.float32, -s, s),
        w_lin=jax.random.uniform(k[4], (n_classes, hidden), jnp.float32, -s, s),
        b_lin=jax.random.uniform(k[5], (n_classes,), jnp.float32, -s, s),
    )


def pack_params(raw, input_size, hidden, n_classes):
    """Pack ALL kernel parameters into one (rows, PW) f32 array (single input DMA).

    Row layout (all blocks 8-sublane aligned):
      [0      : XW     ]  W_ih^T (rows 0..I-1), (b_ih+b_hh) at row I, zeros after
      [XW     : XW+H   ]  W_hh^T
      [XW+H   : XW+2H  ]  W_lin^T zero-padded to PW output lanes
      [XW+2H  : XW+2H+1]  b_lin in lanes [0, n_classes), NEG_BIG elsewhere (softmax mask)
    """
    PW = max(4 * hidden, 128)
    assert input_size + 1 <= XW

    w_in = jnp.zeros((XW, PW), jnp.float32)
    w_in = w_in.at[:input_size, :4 * hidden].set(raw["w_ih"].T)
    w_in = w_in.at[input_size, :4 * hidden].set(raw["b_ih"] + raw["b_hh"])

    whh = jnp.zeros((hidden, PW), jnp.float32).at[:, :4 * hidden].set(raw["w_hh"].T)
    wlin = jnp.zeros((hidden, PW), jnp.float32).at[:, :n_classes].set(raw["w_lin"].T)
    blin = jnp.full((1, PW), NEG_BIG, jnp.float32).at[0, :n_classes].set(raw["b_lin"])

    packed = jnp.concatenate([w_in, whh, wlin, blin], axis=0)
    pad = (-packed.shape[0]) % 8
    if pad:
        packed = jnp.concatenate([packed, jnp.zeros((pad, PW), jnp.float32)], axis=0)
    return packed


# -----------------------------------------------------------------------------
# Pure-JAX reference for correctness
# -----------------------------------------------------------------------------
def reference_forward(x_bsi, raw):
    H = raw["w_hh"].shape[1]
    w_ih_t, w_hh_t = raw["w_ih"].T, raw["w_hh"].T
    b = (raw["b_ih"] + raw["b_hh"])[None, :]
    w_lin_t, b_lin = raw["w_lin"].T, raw["b_lin"][None, :]
    x_tbi = jnp.transpose(x_bsi, (1, 0, 2))

    def step(carry, x_t):
        h, c = carry
        gates = x_t @ w_ih_t + h @ w_hh_t + b
        i = jax.nn.sigmoid(gates[:, 0 * H:1 * H])
        f = jax.nn.sigmoid(gates[:, 1 * H:2 * H])
        g = jnp.tanh(gates[:, 2 * H:3 * H])
        o = jax.nn.sigmoid(gates[:, 3 * H:4 * H])
        c = f * c + i * g
        h = o * jnp.tanh(c)
        return (h, c), h

    B = x_bsi.shape[0]
    (_, _), out_h = lax.scan(step, (jnp.zeros((B, H)), jnp.zeros((B, H))), x_tbi)

    def lin_lsm(hh):
        return jax.nn.log_softmax(hh @ w_lin_t + b_lin, axis=1)

    return lin_lsm(out_h[-1]), lin_lsm(out_h.reshape(-1, H))


if __name__ == "__main__":
    key = jax.random.PRNGKey(0)
    k_x, k_p = jax.random.split(key)

    batch, seq = 8, 8
    x = jax.random.normal(k_x, (batch, seq, INPUT_SIZE), jnp.float32)
    raw_params = init_params(k_p, INPUT_SIZE, HIDDEN, N_CLASSES)
    params_packed = pack_params(raw_params, INPUT_SIZE, HIDDEN, N_CLASSES)

    fwd = jax.jit(lstm_module_forward)
    log_probs_hn, out_packed = fwd(x, params_packed)
    jax.block_until_ready((log_probs_hn, out_packed))

    ref_hn, ref_packed = reference_forward(x, raw_params)
    # Tolerance accounts for bf16 MXU operands on the serial recurrence matmul
    # (f32 accumulation); observed error is well inside this bound.
    assert jnp.allclose(log_probs_hn, ref_hn, atol=2e-2, rtol=2e-2)
    assert jnp.allclose(out_packed, ref_packed, atol=2e-2, rtol=2e-2)

    print("KERNEL_OK")
</pallas_src>

<mosaic_0001>
module attributes {stable_mosaic.version = 11 : i64} {
  func.func @kernel(%arg0: memref<64x8xf32, #tpu.memory_space<vmem>>, %arg1: memref<80x128xf32, #tpu.memory_space<vmem>>, %arg2: memref<64x128xf32, #tpu.memory_space<vmem>>, %arg3: memref<64x128xf32, #tpu.memory_space<vmem>>, %arg4: memref<64x32xf32, #tpu.memory_space<vmem>>) attributes {dimension_semantics = [], scalar_prefetch = 0 : i64, scratch_operands = 2 : i64, tpu.core_type = #tpu.core_type<tc>} {
    %c0 = arith.constant 0 : index
    %c0_0 = arith.constant 0 : index
    %0 = vector.load %arg1[%c0, %c0_0] : memref<80x128xf32, #tpu.memory_space<vmem>>, vector<8x128xf32>
    %c8 = arith.constant 8 : index
    %c0_1 = arith.constant 0 : index
    %1 = vector.load %arg1[%c8, %c0_1] : memref<80x128xf32, #tpu.memory_space<vmem>>, vector<32x128xf32>
    %2 = arith.truncf %1 : vector<32x128xf32> to vector<32x128xbf16>
    %c40 = arith.constant 40 : index
    %c0_2 = arith.constant 0 : index
    %3 = vector.load %arg1[%c40, %c0_2] : memref<80x128xf32, #tpu.memory_space<vmem>>, vector<32x128xf32>
    %c72 = arith.constant 72 : index
    %c0_3 = arith.constant 0 : index
    %4 = vector.load %arg1[%c72, %c0_3] : memref<80x128xf32, #tpu.memory_space<vmem>>, vector<1x128xf32>
    %c0_4 = arith.constant 0 : index
    %c0_5 = arith.constant 0 : index
    %5 = vector.load %arg0[%c0_4, %c0_5] : memref<64x8xf32, #tpu.memory_space<vmem>>, vector<64x8xf32>
    %cst = arith.constant dense<0.000000e+00> : vector<64x128xf32>
    %6 = tpu.matmul %5, %0, %cst {dimension_numbers = #tpu.dot_dimension_numbers<[1], [0], [0], [1], [0, 0, 1, 1], [], []>} : vector<64x8xf32>, vector<8x128xf32>, vector<64x128xf32> -> vector<64x128xf32>
    %c0_6 = arith.constant 0 : index
    %c0_7 = arith.constant 0 : index
    %7 = vector.load %arg3[%c0_6, %c0_7] : memref<64x128xf32, #tpu.memory_space<vmem>>, vector<64x128xf32>
    tpu.vector_store %arg3[%c0_6, %c0_7], %6 {strides = array<i32>} : memref<64x128xf32, #tpu.memory_space<vmem>>, vector<64x128xf32>,
    %cst_8 = arith.constant 0.000000e+00 : f32
    %8 = vector.broadcast %cst_8 : f32 to vector<8x32xf32>
    %cst_9 = arith.constant 0.000000e+00 : f32
    %9 = vector.broadcast %cst_9 : f32 to vector<8x32xf32>
    %c0_10 = arith.constant 0 : index
    %c0_11 = arith.constant 0 : index
    %10 = vector.load %arg3[%c0_10, %c0_11] : memref<64x128xf32, #tpu.memory_space<vmem>>, vector<8x128xf32>
    %11 = arith.truncf %8 : vector<8x32xf32> to vector<8x32xbf16>
    %cst_12 = arith.constant dense<0.000000e+00> : vector<8x128xf32>
    %12 = tpu.matmul %11, %2, %cst_12 {dimension_numbers = #tpu.dot_dimension_numbers<[1], [0], [0], [1], [0, 0, 1, 1], [], []>} : vector<8x32xbf16>, vector<32x128xbf16>, vector<8x128xf32> -> vector<8x128xf32>
    %13 = arith.addf %10, %12 : vector<8x128xf32>
    %14 = arith.negf %13 : vector<8x128xf32>
    %15 = math.exp %14 : vector<8x128xf32>
    %cst_13 = arith.constant 1.000000e+00 : f32
    %16 = vector.broadcast %cst_13 : f32 to vector<8x128xf32>
    %17 = arith.addf %16, %15 : vector<8x128xf32>
    %18 = arith.divf %16, %17 : vector<8x128xf32>
    %19 = math.tanh %13 : vector<8x128xf32>
    %20 = vector.extract_strided_slice %18 {offsets = [0, 0], sizes = [8, 32], strides = [1, 1]} : vector<8x128xf32> to vector<8x32xf32>
    %21 = vector.extract_strided_slice %18 {offsets = [0, 32], sizes = [8, 32], strides = [1, 1]} : vector<8x128xf32> to vector<8x32xf32>
    %22 = vector.extract_strided_slice %19 {offsets = [0, 64], sizes = [8, 32], strides = [1, 1]} : vector<8x128xf32> to vector<8x32xf32>
    %23 = vector.extract_strided_slice %18 {offsets = [0, 96], sizes = [8, 32], strides = [1, 1]} : vector<8x128xf32> to vector<8x32xf32>
    %24 = arith.mulf %21, %9 : vector<8x32xf32>
    %25 = arith.mulf %20, %22 : vector<8x32xf32>
    %26 = arith.addf %24, %25 : vector<8x32xf32>
    %27 = math.tanh %26 : vector<8x32xf32>
    %28 = arith.mulf %23, %27 : vector<8x32xf32>
    %c0_14 = arith.constant 0 : index
    %c0_15 = arith.constant 0 : index
    %29 = vector.load %arg4[%c0_14, %c0_15] : memref<64x32xf32, #tpu.memory_space<vmem>>, vector<8x32xf32>
    tpu.vector_store %arg4[%c0_14, %c0_15], %28 {strides = array<i32>} : memref<64x32xf32, #tpu.memory_space<vmem>>, vector<8x32xf32>,
    %c8_16 = arith.constant 8 : index
    %c0_17 = arith.constant 0 : index
    %30 = vector.load %arg3[%c8_16, %c0_17] : memref<64x128xf32, #tpu.memory_space<vmem>>, vector<8x128xf32>
    %31 = arith.truncf %28 : vector<8x32xf32> to vector<8x32xbf16>
    %cst_18 = arith.constant dense<0.000000e+00> : vector<8x128xf32>
    %32 = tpu.matmul %31, %2, %cst_18 {dimension_numbers = #tpu.dot_dimension_numbers<[1], [0], [0], [1], [0, 0, 1, 1], [], []>} : vector<8x32xbf16>, vector<32x128xbf16>, vector<8x128xf32> -> vector<8x128xf32>
    %33 = arith.addf %30, %32 : vector<8x128xf32>
    %34 = arith.negf %33 : vector<8x128xf32>
    %35 = math.exp %34 : vector<8x128xf32>
    %cst_19 = arith.constant 1.000000e+00 : f32
    %36 = vector.broadcast %cst_19 : f32 to vector<8x128xf32>
    %37 = arith.addf %36, %35 : vector<8x128xf32>
    %38 = arith.divf %36, %37 : vector<8x128xf32>
    %39 = math.tanh %33 : vector<8x128xf32>
    %40 = vector.extract_strided_slice %38 {offsets = [0, 0], sizes = [8, 32], strides = [1, 1]} : vector<8x128xf32> to vector<8x32xf32>
    %41 = vector.extract_strided_slice %38 {offsets = [0, 32], sizes = [8, 32], strides = [1, 1]} : vector<8x128xf32> to vector<8x32xf32>
    %42 = vector.extract_strided_slice %39 {offsets = [0, 64], sizes = [8, 32], strides = [1, 1]} : vector<8x128xf32> to vector<8x32xf32>
    %43 = vector.extract_strided_slice %38 {offsets = [0, 96], sizes = [8, 32], strides = [1, 1]} : vector<8x128xf32> to vector<8x32xf32>
    %44 = arith.mulf %41, %26 : vector<8x32xf32>
    %45 = arith.mulf %40, %42 : vector<8x32xf32>
    %46 = arith.addf %44, %45 : vector<8x32xf32>
    %47 = math.tanh %46 : vector<8x32xf32>
    %48 = arith.mulf %43, %47 : vector<8x32xf32>
    %c8_20 = arith.constant 8 : index
    %c0_21 = arith.constant 0 : index
    %49 = vector.load %arg4[%c8_20, %c0_21] : memref<64x32xf32, #tpu.memory_space<vmem>>, vector<8x32xf32>
    tpu.vector_store %arg4[%c8_20, %c0_21], %48 {strides = array<i32>} : memref<64x32xf32, #tpu.memory_space<vmem>>, vector<8x32xf32>,
    %c16 = arith.constant 16 : index
    %c0_22 = arith.constant 0 : index
    %50 = vector.load %arg3[%c16, %c0_22] : memref<64x128xf32, #tpu.memory_space<vmem>>, vector<8x128xf32>
    %51 = arith.truncf %48 : vector<8x32xf32> to vector<8x32xbf16>
    %cst_23 = arith.constant dense<0.000000e+00> : vector<8x128xf32>
    %52 = tpu.matmul %51, %2, %cst_23 {dimension_numbers = #tpu.dot_dimension_numbers<[1], [0], [0], [1], [0, 0, 1, 1], [], []>} : vector<8x32xbf16>, vector<32x128xbf16>, vector<8x128xf32> -> vector<8x128xf32>
    %53 = arith.addf %50, %52 : vector<8x128xf32>
    %54 = arith.negf %53 : vector<8x128xf32>
    %55 = math.exp %54 : vector<8x128xf32>
    %cst_24 = arith.constant 1.000000e+00 : f32
    %56 = vector.broadcast %cst_24 : f32 to vector<8x128xf32>
    %57 = arith.addf %56, %55 : vector<8x128xf32>
    %58 = arith.divf %56, %57 : vector<8x128xf32>
    %59 = math.tanh %53 : vector<8x128xf32>
    %60 = vector.extract_strided_slice %58 {offsets = [0, 0], sizes = [8, 32], strides = [1, 1]} : vector<8x128xf32> to vector<8x32xf32>
    %61 = vector.extract_strided_slice %58 {offsets = [0, 32], sizes = [8, 32], strides = [1, 1]} : vector<8x128xf32> to vector<8x32xf32>
    %62 = vector.extract_strided_slice %59 {offsets = [0, 64], sizes = [8, 32], strides = [1, 1]} : vector<8x128xf32> to vector<8x32xf32>
    %63 = vector.extract_strided_slice %58 {offsets = [0, 96], sizes = [8, 32], strides = [1, 1]} : vector<8x128xf32> to vector<8x32xf32>
    %64 = arith.mulf %61, %46 : vector<8x32xf32>
    %65 = arith.mulf %60, %62 : vector<8x32xf32>
    %66 = arith.addf %64, %65 : vector<8x32xf32>
    %67 = math.tanh %66 : vector<8x32xf32>
    %68 = arith.mulf %63, %67 : vector<8x32xf32>
    %c16_25 = arith.constant 16 : index
    %c0_26 = arith.constant 0 : index
    %69 = vector.load %arg4[%c16_25, %c0_26] : memref<64x32xf32, #tpu.memory_space<vmem>>, vector<8x32xf32>
    tpu.vector_store %arg4[%c16_25, %c0_26], %68 {strides = array<i32>} : memref<64x32xf32, #tpu.memory_space<vmem>>, vector<8x32xf32>,
    %c24 = arith.constant 24 : index
    %c0_27 = arith.constant 0 : index
    %70 = vector.load %arg3[%c24, %c0_27] : memref<64x128xf32, #tpu.memory_space<vmem>>, vector<8x128xf32>
    %71 = arith.truncf %68 : vector<8x32xf32> to vector<8x32xbf16>
    %cst_28 = arith.constant dense<0.000000e+00> : vector<8x128xf32>
    %72 = tpu.matmul %71, %2, %cst_28 {dimension_numbers = #tpu.dot_dimension_numbers<[1], [0], [0], [1], [0, 0, 1, 1], [], []>} : vector<8x32xbf16>, vector<32x128xbf16>, vector<8x128xf32> -> vector<8x128xf32>
    %73 = arith.addf %70, %72 : vector<8x128xf32>
    %74 = arith.negf %73 : vector<8x128xf32>
    %75 = math.exp %74 : vector<8x128xf32>
    %cst_29 = arith.constant 1.000000e+00 : f32
    %76 = vector.broadcast %cst_29 : f32 to vector<8x128xf32>
    %77 = arith.addf %76, %75 : vector<8x128xf32>
    %78 = arith.divf %76, %77 : vector<8x128xf32>
    %79 = math.tanh %73 : vector<8x128xf32>
    %80 = vector.extract_strided_slice %78 {offsets = [0, 0], sizes = [8, 32], strides = [1, 1]} : vector<8x128xf32> to vector<8x32xf32>
    %81 = vector.extract_strided_slice %78 {offsets = [0, 32], sizes = [8, 32], strides = [1, 1]} : vector<8x128xf32> to vector<8x32xf32>
    %82 = vector.extract_strided_slice %79 {offsets = [0, 64], sizes = [8, 32], strides = [1, 1]} : vector<8x128xf32> to vector<8x32xf32>
    %83 = vector.extract_strided_slice %78 {offsets = [0, 96], sizes = [8, 32], strides = [1, 1]} : vector<8x128xf32> to vector<8x32xf32>
    %84 = arith.mulf %81, %66 : vector<8x32xf32>
    %85 = arith.mulf %80, %82 : vector<8x32xf32>
    %86 = arith.addf %84, %85 : vector<8x32xf32>
    %87 = math.tanh %86 : vector<8x32xf32>
    %88 = arith.mulf %83, %87 : vector<8x32xf32>
    %c24_30 = arith.constant 24 : index
    %c0_31 = arith.constant 0 : index
    %89 = vector.load %arg4[%c24_30, %c0_31] : memref<64x32xf32, #tpu.memory_space<vmem>>, vector<8x32xf32>
    tpu.vector_store %arg4[%c24_30, %c0_31], %88 {strides = array<i32>} : memref<64x32xf32, #tpu.memory_space<vmem>>, vector<8x32xf32>,
    %c32 = arith.constant 32 : index
    %c0_32 = arith.constant 0 : index
    %90 = vector.load %arg3[%c32, %c0_32] : memref<64x128xf32, #tpu.memory_space<vmem>>, vector<8x128xf32>
    %91 = arith.truncf %88 : vector<8x32xf32> to vector<8x32xbf16>
    %cst_33 = arith.constant dense<0.000000e+00> : vector<8x128xf32>
    %92 = tpu.matmul %91, %2, %cst_33 {dimension_numbers = #tpu.dot_dimension_numbers<[1], [0], [0], [1], [0, 0, 1, 1], [], []>} : vector<8x32xbf16>, vector<32x128xbf16>, vector<8x128xf32> -> vector<8x128xf32>
    %93 = arith.addf %90, %92 : vector<8x128xf32>
    %94 = arith.negf %93 : vector<8x128xf32>
    %95 = math.exp %94 : vector<8x128xf32>
    %cst_34 = arith.constant 1.000000e+00 : f32
    %96 = vector.broadcast %cst_34 : f32 to vector<8x128xf32>
    %97 = arith.addf %96, %95 : vector<8x128xf32>
    %98 = arith.divf %96, %97 : vector<8x128xf32>
    %99 = math.tanh %93 : vector<8x128xf32>
    %100 = vector.extract_strided_slice %98 {offsets = [0, 0], sizes = [8, 32], strides = [1, 1]} : vector<8x128xf32> to vector<8x32xf32>
    %101 = vector.extract_strided_slice %98 {offsets = [0, 32], sizes = [8, 32], strides = [1, 1]} : vector<8x128xf32> to vector<8x32xf32>
    %102 = vector.extract_strided_slice %99 {offsets = [0, 64], sizes = [8, 32], strides = [1, 1]} : vector<8x128xf32> to vector<8x32xf32>
    %103 = vector.extract_strided_slice %98 {offsets = [0, 96], sizes = [8, 32], strides = [1, 1]} : vector<8x128xf32> to vector<8x32xf32>
    %104 = arith.mulf %101, %86 : vector<8x32xf32>
    %105 = arith.mulf %100, %102 : vector<8x32xf32>
    %106 = arith.addf %104, %105 : vector<8x32xf32>
    %107 = math.tanh %106 : vector<8x32xf32>
    %108 = arith.mulf %103, %107 : vector<8x32xf32>
    %c32_35 = arith.constant 32 : index
    %c0_36 = arith.constant 0 : index
    %109 = vector.load %arg4[%c32_35, %c0_36] : memref<64x32xf32, #tpu.memory_space<vmem>>, vector<8x32xf32>
    tpu.vector_store %arg4[%c32_35, %c0_36], %108 {strides = array<i32>} : memref<64x32xf32, #tpu.memory_space<vmem>>, vector<8x32xf32>,
    %c40_37 = arith.constant 40 : index
    %c0_38 = arith.constant 0 : index
    %110 = vector.load %arg3[%c40_37, %c0_38] : memref<64x128xf32, #tpu.memory_space<vmem>>, vector<8x128xf32>
    %111 = arith.truncf %108 : vector<8x32xf32> to vector<8x32xbf16>
    %cst_39 = arith.constant dense<0.000000e+00> : vector<8x128xf32>
    %112 = tpu.matmul %111, %2, %cst_39 {dimension_numbers = #tpu.dot_dimension_numbers<[1], [0], [0], [1], [0, 0, 1, 1], [], []>} : vector<8x32xbf16>, vector<32x128xbf16>, vector<8x128xf32> -> vector<8x128xf32>
    %113 = arith.addf %110, %112 : vector<8x128xf32>
    %114 = arith.negf %113 : vector<8x128xf32>
    %115 = math.exp %114 : vector<8x128xf32>
    %cst_40 = arith.constant 1.000000e+00 : f32
    %116 = vector.broadcast %cst_40 : f32 to vector<8x128xf32>
    %117 = arith.addf %116, %115 : vector<8x128xf32>
    %118 = arith.divf %116, %117 : vector<8x128xf32>
    %119 = math.tanh %113 : vector<8x128xf32>
    %120 = vector.extract_strided_slice %118 {offsets = [0, 0], sizes = [8, 32], strides = [1, 1]} : vector<8x128xf32> to vector<8x32xf32>
    %121 = vector.extract_strided_slice %118 {offsets = [0, 32], sizes = [8, 32], strides = [1, 1]} : vector<8x128xf32> to vector<8x32xf32>
    %122 = vector.extract_strided_slice %119 {offsets = [0, 64], sizes = [8, 32], strides = [1, 1]} : vector<8x128xf32> to vector<8x32xf32>
    %123 = vector.extract_strided_slice %118 {offsets = [0, 96], sizes = [8, 32], strides = [1, 1]} : vector<8x128xf32> to vector<8x32xf32>
    %124 = arith.mulf %121, %106 : vector<8x32xf32>
    %125 = arith.mulf %120, %122 : vector<8x32xf32>
    %126 = arith.addf %124, %125 : vector<8x32xf32>
    %127 = math.tanh %126 : vector<8x32xf32>
    %128 = arith.mulf %123, %127 : vector<8x32xf32>
    %c40_41 = arith.constant 40 : index
    %c0_42 = arith.constant 0 : index
    %129 = vector.load %arg4[%c40_41, %c0_42] : memref<64x32xf32, #tpu.memory_space<vmem>>, vector<8x32xf32>
    tpu.vector_store %arg4[%c40_41, %c0_42], %128 {strides = array<i32>} : memref<64x32xf32, #tpu.memory_space<vmem>>, vector<8x32xf32>,
    %c48 = arith.constant 48 : index
    %c0_43 = arith.constant 0 : index
    %130 = vector.load %arg3[%c48, %c0_43] : memref<64x128xf32, #tpu.memory_space<vmem>>, vector<8x128xf32>
    %131 = arith.truncf %128 : vector<8x32xf32> to vector<8x32xbf16>
    %cst_44 = arith.constant dense<0.000000e+00> : vector<8x128xf32>
    %132 = tpu.matmul %131, %2, %cst_44 {dimension_numbers = #tpu.dot_dimension_numbers<[1], [0], [0], [1], [0, 0, 1, 1], [], []>} : vector<8x32xbf16>, vector<32x128xbf16>, vector<8x128xf32> -> vector<8x128xf32>
    %133 = arith.addf %130, %132 : vector<8x128xf32>
    %134 = arith.negf %133 : vector<8x128xf32>
    %135 = math.exp %134 : vector<8x128xf32>
    %cst_45 = arith.constant 1.000000e+00 : f32
    %136 = vector.broadcast %cst_45 : f32 to vector<8x128xf32>
    %137 = arith.addf %136, %135 : vector<8x128xf32>
    %138 = arith.divf %136, %137 : vector<8x128xf32>
    %139 = math.tanh %133 : vector<8x128xf32>
    %140 = vector.extract_strided_slice %138 {offsets = [0, 0], sizes = [8, 32], strides = [1, 1]} : vector<8x128xf32> to vector<8x32xf32>
    %141 = vector.extract_strided_slice %138 {offsets = [0, 32], sizes = [8, 32], strides = [1, 1]} : vector<8x128xf32> to vector<8x32xf32>
    %142 = vector.extract_strided_slice %139 {offsets = [0, 64], sizes = [8, 32], strides = [1, 1]} : vector<8x128xf32> to vector<8x32xf32>
    %143 = vector.extract_strided_slice %138 {offsets = [0, 96], sizes = [8, 32], strides = [1, 1]} : vector<8x128xf32> to vector<8x32xf32>
    %144 = arith.mulf %141, %126 : vector<8x32xf32>
    %145 = arith.mulf %140, %142 : vector<8x32xf32>
    %146 = arith.addf %144, %145 : vector<8x32xf32>
    %147 = math.tanh %146 : vector<8x32xf32>
    %148 = arith.mulf %143, %147 : vector<8x32xf32>
    %c48_46 = arith.constant 48 : index
    %c0_47 = arith.constant 0 : index
    %149 = vector.load %arg4[%c48_46, %c0_47] : memref<64x32xf32, #tpu.memory_space<vmem>>, vector<8x32xf32>
    tpu.vector_store %arg4[%c48_46, %c0_47], %148 {strides = array<i32>} : memref<64x32xf32, #tpu.memory_space<vmem>>, vector<8x32xf32>,
    %c56 = arith.constant 56 : index
    %c0_48 = arith.constant 0 : index
    %150 = vector.load %arg3[%c56, %c0_48] : memref<64x128xf32, #tpu.memory_space<vmem>>, vector<8x128xf32>
    %151 = arith.truncf %148 : vector<8x32xf32> to vector<8x32xbf16>
    %cst_49 = arith.constant dense<0.000000e+00> : vector<8x128xf32>
    %152 = tpu.matmul %151, %2, %cst_49 {dimension_numbers = #tpu.dot_dimension_numbers<[1], [0], [0], [1], [0, 0, 1, 1], [], []>} : vector<8x32xbf16>, vector<32x128xbf16>, vector<8x128xf32> -> vector<8x128xf32>
    %153 = arith.addf %150, %152 : vector<8x128xf32>
    %154 = arith.negf %153 : vector<8x128xf32>
    %155 = math.exp %154 : vector<8x128xf32>
    %cst_50 = arith.constant 1.000000e+00 : f32
    %156 = vector.broadcast %cst_50 : f32 to vector<8x128xf32>
    %157 = arith.addf %156, %155 : vector<8x128xf32>
    %158 = arith.divf %156, %157 : vector<8x128xf32>
    %159 = math.tanh %153 : vector<8x128xf32>
    %160 = vector.extract_strided_slice %158 {offsets = [0, 0], sizes = [8, 32], strides = [1, 1]} : vector<8x128xf32> to vector<8x32xf32>
    %161 = vector.extract_strided_slice %158 {offsets = [0, 32], sizes = [8, 32], strides = [1, 1]} : vector<8x128xf32> to vector<8x32xf32>
    %162 = vector.extract_strided_slice %159 {offsets = [0, 64], sizes = [8, 32], strides = [1, 1]} : vector<8x128xf32> to vector<8x32xf32>
    %163 = vector.extract_strided_slice %158 {offsets = [0, 96], sizes = [8, 32], strides = [1, 1]} : vector<8x128xf32> to vector<8x32xf32>
    %164 = arith.mulf %161, %146 : vector<8x32xf32>
    %165 = arith.mulf %160, %162 : vector<8x32xf32>
    %166 = arith.addf %164, %165 : vector<8x32xf32>
    %167 = math.tanh %166 : vector<8x32xf32>
    %168 = arith.mulf %163, %167 : vector<8x32xf32>
    %c56_51 = arith.constant 56 : index
    %c0_52 = arith.constant 0 : index
    %169 = vector.load %arg4[%c56_51, %c0_52] : memref<64x32xf32, #tpu.memory_space<vmem>>, vector<8x32xf32>
    tpu.vector_store %arg4[%c56_51, %c0_52], %168 {strides = array<i32>} : memref<64x32xf32, #tpu.memory_space<vmem>>, vector<8x32xf32>,
    %c0_53 = arith.constant 0 : index
    %c0_54 = arith.constant 0 : index
    %170 = vector.load %arg4[%c0_53, %c0_54] : memref<64x32xf32, #tpu.memory_space<vmem>>, vector<64x32xf32>
    %cst_55 = arith.constant dense<0.000000e+00> : vector<64x128xf32>
    %171 = tpu.matmul %170, %3, %cst_55 {dimension_numbers = #tpu.dot_dimension_numbers<[1], [0], [0], [1], [0, 0, 1, 1], [], []>} : vector<64x32xf32>, vector<32x128xf32>, vector<64x128xf32> -> vector<64x128xf32>
    %172 = vector.broadcast %4 : vector<1x128xf32> to vector<64x128xf32>
    %173 = arith.addf %171, %172 : vector<64x128xf32>
    %cst_56 = arith.constant dense<0xFF800000> : vector<64xf32>
    %174 = vector.multi_reduction <maximumf>, %173, %cst_56 [1] : vector<64x128xf32> to vector<64xf32>
    %175 = vector.shape_cast %174 : vector<64xf32> to vector<64x1xf32>
    %176 = vector.broadcast %175 : vector<64x1xf32> to vector<64x128xf32>
    %177 = arith.subf %173, %176 : vector<64x128xf32>
    %178 = math.exp %177 : vector<64x128xf32>
    %cst_57 = arith.constant dense<0.000000e+00> : vector<64xf32>
    %179 = vector.multi_reduction <add>, %178, %cst_57 [1] : vector<64x128xf32> to vector<64xf32>
    %180 = vector.shape_cast %179 : vector<64xf32> to vector<64x1xf32>
    %181 = math.log %180 : vector<64x1xf32>
    %182 = arith.addf %181, %175 : vector<64x1xf32>
    %183 = vector.broadcast %182 : vector<64x1xf32> to vector<64x128xf32>
    %184 = arith.subf %173, %183 : vector<64x128xf32>
    %c0_58 = arith.constant 0 : index
    %c0_59 = arith.constant 0 : index
    %185 = vector.load %arg2[%c0_58, %c0_59] : memref<64x128xf32, #tpu.memory_space<vmem>>, vector<64x128xf32>
    tpu.vector_store %arg2[%c0_58, %c0_59], %184 {strides = array<i32>} : memref<64x128xf32, #tpu.memory_space<vmem>>, vector<64x128xf32>,
    return
  }
}

</mosaic_0001>

<bundles_post_ra>
// kernel: lstm_module_forward.1
= control target key start
LH: loop header
LB: loop body
LE: loop exit
PB: predicated region body
PF: predicated region fallthrough
CT: control target
= control target key end

     0   :  { %vm32_vm0 = vcmask 64512   ;;  %v920_v8 = vmov 0   ;;  %s921_s21 = smov 64   ;;  %s922_s22 = smov 32   ;;  %vm107_vm5 = vcmask 261120   ;;  %s1189_s1 = inlined_call_operand.vmem [shape: f32[80,128], index: 1, kind: input, shape index: {}]   ;;  %s1190_s0 = inlined_call_operand.vmem [shape: f32[64,8], index: 0, kind: input, shape index: {}]   ;;  %s1191_s2 = inlined_call_operand.vmem [shape: f32[64,128], index: 2, kind: output, shape index: {}]  }
   0x1   :  { %v15_v0 = vld [vmem:[%s1189_s1 + $0x18] sm:$0xff]  ;;  %v16_v1 = vld [vmem:[%s1189_s1 + $0x20] sm:$0xff]  ;;  %v13_v2 = vld [vmem:[%s1189_s1 + $0x8] sm:$0xff] }
   0x2   :  { %v947_v3 = vpack.c.bf16 %v16_v1, %v15_v0  ;;  %v14_v4 = vld [vmem:[%s1189_s1 + $0x10] sm:$0xff]  ;;  %v12_v5 = vld [vmem:[%s1189_s1] sm:$0xff]  ;;  %v25_v36 = vld [vmem:[%s1190_s0 + $0x8] sm:$0xff] }
   0x3   :  { %v24_v6 = vld [vmem:[%s1190_s0] sm:$0xff]  ;;  %72 = vmatpush.msra.mxu0 %v12_v5  ;;  %v959_v7 = vpack.c.bf16 %v14_v4, %v13_v2  ;;  %v26_v1 = vld [vmem:[%s1190_s0 + $0x10] sm:$0xff] }
   0x4   :  { %117 = vmatpush.bf16.msra.mxu1 %v947_v3  ;;  %789 = vmatmul.msk.f32.vlgmr.msra.gmra.mxu0 %vm32_vm0, %v24_v6 }
   0x5   :  { %181 = vmatpush.bf16.msra.mxu2 %v947_v3 }
   0x8   :  { %118 = vmatpush.bf16.msra.mxu1 %v959_v7 }
   0x9   :  { %182 = vmatpush.bf16.msra.mxu2 %v959_v7 }
   0xb   :  { %119 = vmatmul.bf16.vlgmr.msra.gmra.mxu1 %v920_v8 }
   0xc   :  { %245 = vmatpush.bf16.msrb.mxu1 %v947_v3  ;;  %790 = vmatmul.msk.f32.gmra.mxu0 %vm32_vm0, %v25_v36 }
   0xd   :  { %373 = vmatpush.bf16.msrb.mxu2 %v947_v3 }
  0x10   :  { %246 = vmatpush.bf16.msrb.mxu1 %v959_v7 }
  0x11   :  { %374 = vmatpush.bf16.msrb.mxu2 %v959_v7 }
  0x14   :  { %309 = vmatpush.bf16.msra.mxu1 %v947_v3  ;;  %791 = vmatmul.msk.f32.gmra.mxu0 %vm32_vm0, %v26_v1 }
  0x18   :  { %310 = vmatpush.bf16.msra.mxu1 %v959_v7 }
  0x81   :  { %v74_v9 = vpop.f32.mrf.mxu0 }
  0x88   :  { %v120_v10 = vpop.f32.mrf.mxu1 }
  0x89   :  { %v124_v11 = vadd.f32 %v120_v10, %v74_v9  ;;  %v77_v38 = vpop.f32.mrf.mxu0 }
  0x8b   :  { %824 = vtanh.f32 %v124_v11  ;;  %v797_v14 = vmul.f32 -1.442695, %v124_v11 }
  0x8d   :  { %826 = vpow2.f32 %v797_v14 }
  0x90   :  { %v122_v12 = vpop.f32.mrf.mxu1 }
  0x91   :  { %v825_v13 = vpop.eup %824  ;;  %v80_v4 = vpop.f32.mrf.mxu0 }
  0x92   :  { %147 = vrot.lane.b32.xlu0 %v825_v13, %s921_s21 }
  0x93   :  { %v827_v15 = vpop.eup %826 }
  0x94   :  { %v128_v16 = vadd.f32 1.0, %v827_v15 }
  0x96   :  { %828 = vrcp.f32 %v128_v16  ;;  %v140_v22 = vand.u32 2147483648, %v128_v16  ;;  %vm134_vm2 = vweird.f32 %v128_v16  ;;  %v138_v23 = vand.u32 2147483647, %v128_v16 }
  0x98   :  { %v141_v25 = vor.u32 1.1754944e-38, %v140_v22  ;;  %vm139_vm4 = vcmp.eq.f32.partialorder %v138_v23, 8.507059e+37 }
  0x9c   :  { %v829_v17 = vpop.eup %828 }
  0x9d   :  { %v130_v18 = vmul.f32 %v829_v17, %v128_v16  ;;  %vm135_vm1 = vweird.f32 %v829_v17 }
  0x9e   :  { %vm136_vm3 = vmor %vm134_vm2, %vm135_vm1 }
  0x9f   :  { %v131_v19 = vsub.f32 1.0, %v130_v18 }
  0xa1   :  { %v132_v20 = vmul.f32 %v829_v17, %v131_v19 }
  0xa3   :  { %v133_v21 = vadd.f32 %v829_v17, %v132_v20 }
  0xa5   :  { %v137_v24 = vsel %vm136_vm3, %v829_v17, %v133_v21 }
  0xa6   :  { %v142_v27 = vsel %vm139_vm4, %v141_v25, %v137_v24 }
  0xa7   :  { %v145_v29 = vmul.f32 0.0, %v142_v27 }
 0x104   :  { %v148_v26 = vpop.permute.xlu0 %147 }
 0x105   :  { %v150_v28 = vmul.f32 %v148_v26, %v142_v27 }
 0x107   :  { %152 = vrot.lane.b32.xlu0 %v150_v28, %s922_s22 }
 0x179   :  { %v153_v30 = vpop.permute.xlu0 %152 }
 0x17a   :  { %v155_v31 = vadd.f32 %v153_v30, %v145_v29 }
 0x17c   :  { %830 = vtanh.f32 %v155_v31 }
 0x182   :  { %v831_v32 = vpop.eup %830 }
 0x183   :  { %158 = vrot.lane.b32.xlu1 %v831_v32, %s921_s21  ;;  %v27_v32 = vld [vmem:[%s1190_s0 + $0x18] sm:$0xff] }
 0x184   :  { %792 = vmatmul.msk.f32.gmra.mxu0 %vm32_vm0, %v27_v32 }
 0x1f5   :  { %v159_v33 = vpop.permute.xlu1 %158 }
 0x1f6   :  { %v974_v34 = vmul.f32 %v159_v33, %v142_v27 }
 0x1f8   :  { %v168_v35 = vpack.c.bf16 %v974_v34, %v974_v34 }
 0x1fa   :  { %170 = vrot.lane.b32.xlu1 %v168_v35, %s922_s22 }
 0x201   :  { %v83_v35 = vpop.f32.mrf.mxu0 }
 0x26c   :  { %v171_v37 = vpop.permute.xlu1 %170 }
 0x26d   :  { %798 = vmatmul.msk.bf16.vlgmr.msra.gmra.mxu2 %vm107_vm5, %v171_v37 }
 0x26e   :  { %437 = vmatpush.bf16.msra.mxu2 %v947_v3 }
 0x272   :  { %438 = vmatpush.bf16.msra.mxu2 %v959_v7 }
 0x2f0   :  { %v184_v39 = vpop.f32.mrf.mxu2 }
 0x2f1   :  { %v188_v40 = vadd.f32 %v184_v39, %v77_v38 }
 0x2f3   :  { %832 = vtanh.f32 %v188_v40  ;;  %v799_v43 = vmul.f32 -1.442695, %v188_v40 }
 0x2f5   :  { %834 = vpow2.f32 %v799_v43 }
 0x2f8   :  { %v186_v41 = vpop.f32.mrf.mxu2 }
 0x2f9   :  { %v833_v42 = vpop.eup %832 }
 0x2fa   :  { %211 = vrot.lane.b32.xlu2 %v833_v42, %s921_s21 }
 0x2fb   :  { %v835_v44 = vpop.eup %834 }
 0x2fc   :  { %v192_v45 = vadd.f32 1.0, %v835_v44 }
 0x2fe   :  { %836 = vrcp.f32 %v192_v45  ;;  %v204_v51 = vand.u32 2147483648, %v192_v45  ;;  %vm198_vm7 = vweird.f32 %v192_v45  ;;  %v202_v52 = vand.u32 2147483647, %v192_v45 }
 0x300   :  { %v205_v54 = vor.u32 1.1754944e-38, %v204_v51  ;;  %vm203_vm9 = vcmp.eq.f32.partialorder %v202_v52, 8.507059e+37 }
 0x304   :  { %v837_v46 = vpop.eup %836 }
 0x305   :  { %v194_v47 = vmul.f32 %v837_v46, %v192_v45  ;;  %vm199_vm6 = vweird.f32 %v837_v46 }
 0x306   :  { %vm200_vm8 = vmor %vm198_vm7, %vm199_vm6 }
 0x307   :  { %v195_v48 = vsub.f32 1.0, %v194_v47 }
 0x309   :  { %v196_v49 = vmul.f32 %v837_v46, %v195_v48 }
 0x30b   :  { %v197_v50 = vadd.f32 %v837_v46, %v196_v49 }
 0x30d   :  { %v201_v53 = vsel %vm200_vm8, %v837_v46, %v197_v50 }
 0x30e   :  { %v206_v56 = vsel %vm203_vm9, %v205_v54, %v201_v53 }
 0x30f   :  { %v209_v58 = vmul.f32 %v206_v56, %v155_v31 }
 0x354   :  { %v212_v55 = vpop.permute.xlu2 %211 }
 0x355   :  { %v214_v57 = vmul.f32 %v212_v55, %v206_v56 }
 0x357   :  { %216 = vrot.lane.b32.xlu2 %v214_v57, %s922_s22 }
 0x3b1   :  { %v217_v59 = vpop.permute.xlu2 %216 }
 0x3b2   :  { %v219_v60 = vadd.f32 %v217_v59, %v209_v58 }
 0x3b4   :  { %838 = vtanh.f32 %v219_v60 }
 0x3ba   :  { %v839_v61 = vpop.eup %838 }
 0x3bb   :  { %222 = vrot.lane.b32.xlu0 %v839_v61, %s921_s21 }
 0x42d   :  { %v223_v62 = vpop.permute.xlu0 %222 }
 0x42e   :  { %v989_v63 = vmul.f32 %v223_v62, %v206_v56  ;;  %v28_v62 = vld [vmem:[%s1190_s0 + $0x20] sm:$0xff] }
 0x42f   :  { %793 = vmatmul.msk.f32.gmra.mxu0 %vm32_vm0, %v28_v62 }
 0x430   :  { %v232_v0 = vpack.c.bf16 %v989_v63, %v989_v63 }
 0x432   :  { %234 = vrot.lane.b32.xlu1 %v232_v0, %s922_s22 }
 0x4a4   :  { %v235_v2 = vpop.permute.xlu1 %234 }
 0x4a5   :  { %800 = vmatmul.msk.bf16.vlgmr.msrb.gmra.mxu1 %vm107_vm5, %v235_v2 }
 0x4a6   :  { %501 = vmatpush.bf16.msrb.mxu1 %v947_v3 }
 0x4aa   :  { %502 = vmatpush.bf16.msrb.mxu1 %v959_v7 }
 0x4ac   :  { %v86_v1 = vpop.f32.mrf.mxu0 }
 0x522   :  { %v248_v5 = vpop.f32.mrf.mxu1 }
 0x523   :  { %v252_v6 = vadd.f32 %v248_v5, %v80_v4 }
 0x525   :  { %840 = vtanh.f32 %v252_v6  ;;  %v801_v10 = vmul.f32 -1.442695, %v252_v6 }
 0x527   :  { %842 = vpow2.f32 %v801_v10 }
 0x52a   :  { %v250_v8 = vpop.f32.mrf.mxu1 }
 0x52b   :  { %v841_v9 = vpop.eup %840 }
 0x52c   :  { %275 = vrot.lane.b32.xlu2 %v841_v9, %s921_s21 }
 0x52d   :  { %v843_v11 = vpop.eup %842 }
 0x52e   :  { %v256_v12 = vadd.f32 1.0, %v843_v11 }
 0x530   :  { %844 = vrcp.f32 %v256_v12  ;;  %v268_v18 = vand.u32 2147483648, %v256_v12  ;;  %vm262_vm11 = vweird.f32 %v256_v12  ;;  %v266_v19 = vand.u32 2147483647, %v256_v12 }
 0x532   :  { %v269_v21 = vor.u32 1.1754944e-38, %v268_v18  ;;  %vm267_vm13 = vcmp.eq.f32.partialorder %v266_v19, 8.507059e+37 }
 0x536   :  { %v845_v13 = vpop.eup %844 }
 0x537   :  { %v258_v14 = vmul.f32 %v845_v13, %v256_v12  ;;  %vm263_vm10 = vweird.f32 %v845_v13 }
 0x538   :  { %vm264_vm12 = vmor %vm262_vm11, %vm263_vm10 }
 0x539   :  { %v259_v15 = vsub.f32 1.0, %v258_v14 }
 0x53b   :  { %v260_v16 = vmul.f32 %v845_v13, %v259_v15 }
 0x53d   :  { %v261_v17 = vadd.f32 %v845_v13, %v260_v16 }
 0x53f   :  { %v265_v20 = vsel %vm264_vm12, %v845_v13, %v261_v17 }
 0x540   :  { %v270_v23 = vsel %vm267_vm13, %v269_v21, %v265_v20 }
 0x541   :  { %v273_v25 = vmul.f32 %v270_v23, %v219_v60 }
 0x586   :  { %v276_v22 = vpop.permute.xlu2 %275 }
 0x587   :  { %v278_v24 = vmul.f32 %v276_v22, %v270_v23 }
 0x589   :  { %280 = vrot.lane.b32.xlu0 %v278_v24, %s922_s22 }
 0x5fb   :  { %v281_v26 = vpop.permute.xlu0 %280 }
 0x5fc   :  { %v283_v27 = vadd.f32 %v281_v26, %v273_v25 }
 0x5fe   :  { %846 = vtanh.f32 %v283_v27 }
 0x604   :  { %v847_v28 = vpop.eup %846 }
 0x605   :  { %286 = vrot.lane.b32.xlu1 %v847_v28, %s921_s21  ;;  %v29_v28 = vld [vmem:[%s1190_s0 + $0x28] sm:$0xff] }
 0x606   :  { %794 = vmatmul.msk.f32.gmra.mxu0 %vm32_vm0, %v29_v28  ;;  %v22_v28 = vld [vmem:[%s1189_s1 + $0x40] sm:$0xff] }
 0x607   :  { %660 = vmatpush.msra.mxu3 %v22_v28 }
 0x677   :  { %v287_v29 = vpop.permute.xlu1 %286 }
 0x678   :  { %v1004_v30 = vmul.f32 %v287_v29, %v270_v23 }
 0x67a   :  { %v296_v31 = vpack.c.bf16 %v1004_v30, %v1004_v30 }
 0x67c   :  { %298 = vrot.lane.b32.xlu2 %v296_v31, %s922_s22 }
 0x683   :  { %v89_v31 = vpop.f32.mrf.mxu0 }
 0x6d6   :  { %v299_v33 = vpop.permute.xlu2 %298 }
 0x6d7   :  { %802 = vmatmul.msk.bf16.vlgmr.msra.gmra.mxu1 %vm107_vm5, %v299_v33 }
 0x754   :  { %v312_v36 = vpop.f32.mrf.mxu1 }
 0x755   :  { %v316_v37 = vadd.f32 %v312_v36, %v83_v35 }
 0x757   :  { %848 = vtanh.f32 %v316_v37  ;;  %v803_v40 = vmul.f32 -1.442695, %v316_v37 }
 0x759   :  { %850 = vpow2.f32 %v803_v40 }
 0x75c   :  { %v314_v38 = vpop.f32.mrf.mxu1 }
 0x75d   :  { %v849_v39 = vpop.eup %848 }
 0x75e   :  { %339 = vrot.lane.b32.xlu0 %v849_v39, %s921_s21 }
 0x75f   :  { %v851_v41 = vpop.eup %850 }
 0x760   :  { %v320_v42 = vadd.f32 1.0, %v851_v41 }
 0x762   :  { %852 = vrcp.f32 %v320_v42  ;;  %v332_v48 = vand.u32 2147483648, %v320_v42  ;;  %vm326_vm15 = vweird.f32 %v320_v42  ;;  %v330_v49 = vand.u32 2147483647, %v320_v42 }
 0x764   :  { %v333_v51 = vor.u32 1.1754944e-38, %v332_v48  ;;  %vm331_vm2 = vcmp.eq.f32.partialorder %v330_v49, 8.507059e+37 }
 0x768   :  { %v853_v43 = vpop.eup %852 }
 0x769   :  { %v322_v44 = vmul.f32 %v853_v43, %v320_v42  ;;  %vm327_vm14 = vweird.f32 %v853_v43 }
 0x76a   :  { %vm328_vm1 = vmor %vm326_vm15, %vm327_vm14 }
 0x76b   :  { %v323_v45 = vsub.f32 1.0, %v322_v44 }
 0x76d   :  { %v324_v46 = vmul.f32 %v853_v43, %v323_v45 }
 0x76f   :  { %v325_v47 = vadd.f32 %v853_v43, %v324_v46 }
 0x771   :  { %v329_v50 = vsel %vm328_vm1, %v853_v43, %v325_v47 }
 0x772   :  { %v334_v53 = vsel %vm331_vm2, %v333_v51, %v329_v50 }
 0x773   :  { %v337_v55 = vmul.f32 %v334_v53, %v283_v27 }
 0x7d0   :  { %v340_v52 = vpop.permute.xlu0 %339 }
 0x7d1   :  { %v342_v54 = vmul.f32 %v340_v52, %v334_v53 }
 0x7d3   :  { %344 = vrot.lane.b32.xlu1 %v342_v54, %s922_s22 }
 0x845   :  { %v345_v56 = vpop.permute.xlu1 %344 }
 0x846   :  { %v347_v57 = vadd.f32 %v345_v56, %v337_v55 }
 0x848   :  { %854 = vtanh.f32 %v347_v57 }
 0x84e   :  { %v855_v58 = vpop.eup %854 }
 0x84f   :  { %350 = vrot.lane.b32.xlu2 %v855_v58, %s921_s21 }
 0x8a9   :  { %v351_v59 = vpop.permute.xlu2 %350 }
 0x8aa   :  { %v1017_v60 = vmul.f32 %v351_v59, %v334_v53  ;;  %v30_v59 = vld [vmem:[%s1190_s0 + $0x30] sm:$0xff] }
 0x8ab   :  { %795 = vmatmul.msk.f32.gmra.mxu0 %vm32_vm0, %v30_v59 }
 0x8ac   :  { %v360_v61 = vpack.c.bf16 %v1017_v60, %v1017_v60 }
 0x8ae   :  { %362 = vrot.lane.b32.xlu0 %v360_v61, %s922_s22 }
 0x920   :  { %v363_v0 = vpop.permute.xlu0 %362 }
 0x921   :  { %804 = vmatmul.msk.bf16.vlgmr.msrb.gmra.mxu2 %vm107_vm5, %v363_v0 }
 0x922   :  { %565 = vmatpush.bf16.msrb.mxu2 %v947_v3 }
 0x926   :  { %566 = vmatpush.bf16.msrb.mxu2 %v959_v7 }
 0x928   :  { %v92_v62 = vpop.f32.mrf.mxu0 }
 0x9a4   :  { %v376_v2 = vpop.f32.mrf.mxu2 }
 0x9a5   :  { %v380_v4 = vadd.f32 %v376_v2, %v86_v1 }
 0x9a7   :  { %856 = vtanh.f32 %v380_v4  ;;  %v805_v8 = vmul.f32 -1.442695, %v380_v4 }
 0x9a9   :  { %858 = vpow2.f32 %v805_v8 }
 0x9ac   :  { %v378_v5 = vpop.f32.mrf.mxu2 }
 0x9ad   :  { %v857_v6 = vpop.eup %856 }
 0x9ae   :  { %403 = vrot.lane.b32.xlu1 %v857_v6, %s921_s21 }
 0x9af   :  { %v859_v9 = vpop.eup %858 }
 0x9b0   :  { %v384_v10 = vadd.f32 1.0, %v859_v9 }
 0x9b2   :  { %860 = vrcp.f32 %v384_v10  ;;  %v396_v7 = vand.u32 2147483648, %v384_v10  ;;  %vm390_vm4 = vweird.f32 %v384_v10  ;;  %v394_v15 = vand.u32 2147483647, %v384_v10 }
 0x9b4   :  { %v397_v17 = vor.u32 1.1754944e-38, %v396_v7  ;;  %vm395_vm7 = vcmp.eq.f32.partialorder %v394_v15, 8.507059e+37 }
 0x9b8   :  { %v861_v11 = vpop.eup %860 }
 0x9b9   :  { %v386_v12 = vmul.f32 %v861_v11, %v384_v10  ;;  %vm391_vm3 = vweird.f32 %v861_v11 }
 0x9ba   :  { %vm392_vm6 = vmor %vm390_vm4, %vm391_vm3 }
 0x9bb   :  { %v387_v13 = vsub.f32 1.0, %v386_v12 }
 0x9bd   :  { %v388_v14 = vmul.f32 %v861_v11, %v387_v13 }
 0x9bf   :  { %v389_v3 = vadd.f32 %v861_v11, %v388_v14 }
 0x9c1   :  { %v393_v16 = vsel %vm392_vm6, %v861_v11, %v389_v3 }
 0x9c2   :  { %v398_v19 = vsel %vm395_vm7, %v397_v17, %v393_v16 }
 0x9c3   :  { %v401_v21 = vmul.f32 %v398_v19, %v347_v57 }
 0xa20   :  { %v404_v18 = vpop.permute.xlu1 %403 }
 0xa21   :  { %v406_v20 = vmul.f32 %v404_v18, %v398_v19 }
 0xa23   :  { %408 = vrot.lane.b32.xlu2 %v406_v20, %s922_s22 }
 0xa7d   :  { %v409_v22 = vpop.permute.xlu2 %408 }
 0xa7e   :  { %v411_v23 = vadd.f32 %v409_v22, %v401_v21 }
 0xa80   :  { %862 = vtanh.f32 %v411_v23 }
 0xa86   :  { %v863_v24 = vpop.eup %862 }
 0xa87   :  { %414 = vrot.lane.b32.xlu0 %v863_v24, %s921_s21 }
 0xaf9   :  { %v415_v25 = vpop.permute.xlu0 %414 }
 0xafa   :  { %v1032_v26 = vmul.f32 %v415_v25, %v398_v19 }
 0xafc   :  { %v424_v27 = vpack.c.bf16 %v1032_v26, %v1032_v26 }
 0xafe   :  { %426 = vrot.lane.b32.xlu1 %v424_v27, %s922_s22  ;;  %v31_v27 = vld [vmem:[%s1190_s0 + $0x38] sm:$0xff] }
 0xaff   :  { %796 = vmatmul.msk.f32.gmra.mxu0 %vm32_vm0, %v31_v27 }
 0xb70   :  { %v427_v29 = vpop.permute.xlu1 %426 }
 0xb71   :  { %806 = vmatmul.msk.bf16.vlgmr.msra.gmra.mxu2 %vm107_vm5, %v427_v29  ;;  %v21_v29 = vld [vmem:[%s1189_s1 + $0x38] sm:$0xff] }
 0xb72   :  { %661 = vmatpush.msra.mxu3 %v21_v29 }
 0xbf4   :  { %v440_v32 = vpop.f32.mrf.mxu2 }
 0xbf5   :  { %v444_v33 = vadd.f32 %v440_v32, %v89_v31 }
 0xbf7   :  { %864 = vtanh.f32 %v444_v33  ;;  %v807_v37 = vmul.f32 -1.442695, %v444_v33 }
 0xbf9   :  { %866 = vpow2.f32 %v807_v37  ;;  %v95_v37 = vpop.f32.mrf.mxu0 }
 0xbfc   :  { %v442_v35 = vpop.f32.mrf.mxu2 }
 0xbfd   :  { %v865_v36 = vpop.eup %864 }
 0xbfe   :  { %467 = vrot.lane.b32.xlu2 %v865_v36, %s921_s21 }
 0xbff   :  { %v867_v38 = vpop.eup %866 }
 0xc00   :  { %v448_v39 = vadd.f32 1.0, %v867_v38 }
 0xc02   :  { %868 = vrcp.f32 %v448_v39  ;;  %v460_v45 = vand.u32 2147483648, %v448_v39  ;;  %vm454_vm9 = vweird.f32 %v448_v39  ;;  %v458_v46 = vand.u32 2147483647, %v448_v39 }
 0xc04   :  { %v461_v48 = vor.u32 1.1754944e-38, %v460_v45  ;;  %vm459_vm11 = vcmp.eq.f32.partialorder %v458_v46, 8.507059e+37 }
 0xc08   :  { %v869_v40 = vpop.eup %868 }
 0xc09   :  { %v450_v41 = vmul.f32 %v869_v40, %v448_v39  ;;  %vm455_vm8 = vweird.f32 %v869_v40 }
 0xc0a   :  { %vm456_vm10 = vmor %vm454_vm9, %vm455_vm8 }
 0xc0b   :  { %v451_v42 = vsub.f32 1.0, %v450_v41 }
 0xc0d   :  { %v452_v43 = vmul.f32 %v869_v40, %v451_v42  ;;  %v1088_v42 = vld [vmem:[%s1189_s1 + $0x48] ss:$0 sm:$0xff] }
 0xc0f   :  { %v453_v44 = vadd.f32 %v869_v40, %v452_v43 }
 0xc11   :  { %v457_v47 = vsel %vm456_vm10, %v869_v40, %v453_v44 }
 0xc12   :  { %v462_v50 = vsel %vm459_vm11, %v461_v48, %v457_v47 }
 0xc13   :  { %v465_v52 = vmul.f32 %v462_v50, %v411_v23 }
 0xc58   :  { %v468_v49 = vpop.permute.xlu2 %467 }
 0xc59   :  { %v470_v51 = vmul.f32 %v468_v49, %v462_v50 }
 0xc5b   :  { %472 = vrot.lane.b32.xlu0 %v470_v51, %s922_s22 }
 0xccd   :  { %v473_v53 = vpop.permute.xlu0 %472 }
 0xcce   :  { %v475_v54 = vadd.f32 %v473_v53, %v465_v52 }
 0xcd0   :  { %870 = vtanh.f32 %v475_v54 }
 0xcd6   :  { %v871_v55 = vpop.eup %870 }
 0xcd7   :  { %478 = vrot.lane.b32.xlu1 %v871_v55, %s921_s21 }
 0xd49   :  { %v479_v56 = vpop.permute.xlu1 %478 }
 0xd4a   :  { %v481_v57 = vmul.f32 %v479_v56, %v462_v50 }
 0xd4c   :  { %v488_v58 = vpack.c.bf16 %v481_v57, %v481_v57 }
 0xd4e   :  { %490 = vrot.lane.b32.xlu2 %v488_v58, %s922_s22 }
 0xda8   :  { %v491_v61 = vpop.permute.xlu2 %490 }
 0xda9   :  { %808 = vmatmul.msk.bf16.vlgmr.msrb.gmra.mxu1 %vm107_vm5, %v491_v61 }
 0xe26   :  { %v504_v0 = vpop.f32.mrf.mxu1 }
 0xe27   :  { %v508_v1 = vadd.f32 %v504_v0, %v92_v62 }
 0xe29   :  { %872 = vtanh.f32 %v508_v1  ;;  %v809_v5 = vmul.f32 -1.442695, %v508_v1 }
 0xe2b   :  { %874 = vpow2.f32 %v809_v5 }
 0xe2e   :  { %v506_v2 = vpop.f32.mrf.mxu1 }
 0xe2f   :  { %v873_v4 = vpop.eup %872 }
 0xe30   :  { %531 = vrot.lane.b32.xlu0 %v873_v4, %s921_s21 }
 0xe31   :  { %v875_v6 = vpop.eup %874 }
 0xe32   :  { %v512_v8 = vadd.f32 1.0, %v875_v6 }
 0xe34   :  { %876 = vrcp.f32 %v512_v8  ;;  %v524_v14 = vand.u32 2147483648, %v512_v8  ;;  %vm518_vm13 = vweird.f32 %v512_v8  ;;  %v522_v3 = vand.u32 2147483647, %v512_v8 }
 0xe36   :  { %v525_v15 = vor.u32 1.1754944e-38, %v524_v14  ;;  %vm523_vm15 = vcmp.eq.f32.partialorder %v522_v3, 8.507059e+37 }
 0xe3a   :  { %v877_v9 = vpop.eup %876 }
 0xe3b   :  { %v514_v10 = vmul.f32 %v877_v9, %v512_v8  ;;  %vm519_vm12 = vweird.f32 %v877_v9 }
 0xe3c   :  { %vm520_vm14 = vmor %vm518_vm13, %vm519_vm12 }
 0xe3d   :  { %v515_v11 = vsub.f32 1.0, %v514_v10 }
 0xe3f   :  { %v516_v12 = vmul.f32 %v877_v9, %v515_v11 }
 0xe41   :  { %v517_v13 = vadd.f32 %v877_v9, %v516_v12 }
 0xe43   :  { %v521_v7 = vsel %vm520_vm14, %v877_v9, %v517_v13 }
 0xe44   :  { %v526_v17 = vsel %vm523_vm15, %v525_v15, %v521_v7 }
 0xe45   :  { %v529_v19 = vmul.f32 %v526_v17, %v475_v54 }
 0xea2   :  { %v532_v16 = vpop.permute.xlu0 %531 }
 0xea3   :  { %v534_v18 = vmul.f32 %v532_v16, %v526_v17 }
 0xea5   :  { %536 = vrot.lane.b32.xlu1 %v534_v18, %s922_s22 }
 0xf17   :  { %v537_v20 = vpop.permute.xlu1 %536 }
 0xf18   :  { %v1053_v21 = vadd.f32 %v537_v20, %v529_v19 }
 0xf1a   :  { %878 = vtanh.f32 %v1053_v21 }
 0xf20   :  { %v879_v22 = vpop.eup %878 }
 0xf21   :  { %542 = vrot.lane.b32.xlu2 %v879_v22, %s921_s21 }
 0xf7b   :  { %v543_v23 = vpop.permute.xlu2 %542 }
 0xf7c   :  { %v545_v24 = vmul.f32 %v543_v23, %v526_v17 }
 0xf7e   :  { %v552_v25 = vpack.c.bf16 %v545_v24, %v545_v24 }
 0xf80   :  { %554 = vrot.lane.b32.xlu0 %v552_v25, %s922_s22 }
 0xf88   :  { %163 = vrot.lane.b32.xlu0 %v974_v34, %s922_s22  ;;  %v20_v34 = vld [vmem:[%s1189_s1 + $0x30] sm:$0xff] }
 0xf89   :  { %662 = vmatpush.msra.mxu3 %v20_v34 }
 0xf90   :  { %291 = vrot.lane.b32.xlu0 %v1004_v30, %s922_s22  ;;  %v19_v30 = vld [vmem:[%s1189_s1 + $0x28] sm:$0xff] }
 0xf91   :  { %663 = vmatpush.msra.mxu3 %v19_v30 }
 0xf98   :  { %483 = vrot.lane.b32.xlu0 %v481_v57, %s922_s22 }
 0xff2   :  { %v555_v31 = vpop.permute.xlu0 %554 }
 0xff3   :  { %810 = vmatmul.msk.bf16.vlgmr.msrb.gmra.mxu2 %vm107_vm5, %v555_v31 }
 0xffa   :  { %v164_v32 = vpop.permute.xlu0 %163 }
 0xffb   :  { %166 = vst.msk [vmem:[#allocation3] sm:$0xff] %vm107_vm5, %v164_v32 }
0x1002   :  { %v292_v33 = vpop.permute.xlu0 %291  ;;  %v615_v35 = vld [vmem:[#allocation3] sm:$0xff] }
0x1003   :  { %294 = vst.msk [vmem:[#allocation3 + $0x10] sm:$0xff] %vm107_vm5, %v292_v33  ;;  %812 = vmatmul.msk.f32.vlgmr.msra.gmra.mxu3 %vm107_vm5, %v615_v35 }
0x100a   :  { %v484_v36 = vpop.permute.xlu0 %483  ;;  %v617_v0 = vld [vmem:[#allocation3 + $0x10] sm:$0xff] }
0x100b   :  { %486 = vst.msk [vmem:[#allocation3 + $0x28] sm:$0xff] %vm107_vm5, %v484_v36 }
0x1012   :  { %v620_v14 = vld [vmem:[#allocation3 + $0x28] sm:$0xff] }
0x1076   :  { %v568_v38 = vpop.f32.mrf.mxu2 }
0x1077   :  { %v572_v39 = vadd.f32 %v568_v38, %v95_v37 }
0x1079   :  { %880 = vtanh.f32 %v572_v39  ;;  %v811_v45 = vmul.f32 -1.442695, %v572_v39 }
0x107b   :  { %882 = vpow2.f32 %v811_v45 }
0x107e   :  { %v570_v40 = vpop.f32.mrf.mxu2 }
0x107f   :  { %v881_v41 = vpop.eup %880 }
0x1080   :  { %595 = vrot.lane.b32.xlu1 %v881_v41, %s921_s21 }
0x1081   :  { %v883_v46 = vpop.eup %882 }
0x1082   :  { %v576_v47 = vadd.f32 1.0, %v883_v46 }
0x1084   :  { %884 = vrcp.f32 %v576_v47  ;;  %v588_v53 = vand.u32 2147483648, %v576_v47  ;;  %vm582_vm1 = vweird.f32 %v576_v47 }
0x1086   :  { %v665_v43 = vpop.f32.mrf.mxu3  ;;  %v589_v55 = vor.u32 1.1754944e-38, %v588_v53 }
0x1087   :  { %v1091_v44 = vadd.f32 %v1088_v42, %v665_v43 }
0x1088   :  { %227 = vrot.lane.b32.xlu1 %v989_v63, %s922_s22  ;;  %v586_v63 = vand.u32 2147483647, %v576_v47 }
0x1089   :  { %689 = vmax.xlane.f32.xlu0 %v1091_v44 }
0x108a   :  { %v885_v48 = vpop.eup %884  ;;  %vm587_vm3 = vcmp.eq.f32.partialorder %v586_v63, 8.507059e+37 }
0x108b   :  { %v578_v49 = vmul.f32 %v885_v48, %v576_v47  ;;  %vm583_vm0 = vweird.f32 %v885_v48 }
0x108c   :  { %vm584_vm2 = vmor %vm582_vm1, %vm583_vm0 }
0x108d   :  { %v579_v50 = vsub.f32 1.0, %v578_v49 }
0x108f   :  { %v580_v51 = vmul.f32 %v885_v48, %v579_v50 }
0x1090   :  { %355 = vrot.lane.b32.xlu1 %v1017_v60, %s922_s22 }
0x1091   :  { %v581_v52 = vadd.f32 %v885_v48, %v580_v51 }
0x1093   :  { %v585_v54 = vsel %vm584_vm2, %v885_v48, %v581_v52 }
0x1094   :  { %v590_v56 = vsel %vm587_vm3, %v589_v55, %v585_v54 }
0x1095   :  { %v593_v2 = vmul.f32 %v590_v56, %v1053_v21 }
0x1098   :  { %547 = vrot.lane.b32.xlu1 %v545_v24, %s922_s22 }
0x10f2   :  { %v596_v60 = vpop.permute.xlu1 %595 }
0x10f3   :  { %v598_v57 = vmul.f32 %v596_v60, %v590_v56 }
0x10f5   :  { %600 = vrot.lane.b32.xlu2 %v598_v57, %s922_s22 }
0x10fa   :  { %v228_v58 = vpop.permute.xlu1 %227 }
0x10fb   :  { %230 = vst.msk [vmem:[#allocation3 + $0x8] sm:$0xff] %vm107_vm5, %v228_v58 }
0x10fc   :  { %v690_v20 = vpop.xlane.xlu0 %689 }
0x10fd   :  { %v705_v22 = vsub.f32 %v1091_v44, %v690_v20 }
0x10ff   :  { %v713_v23 = vmul.f32 1.442695, %v705_v22 }
0x1102   :  { %v356_v59 = vpop.permute.xlu1 %355  ;;  %v616_v61 = vld [vmem:[#allocation3 + $0x8] sm:$0xff] }
0x1103   :  { %358 = vst.msk [vmem:[#allocation3 + $0x18] sm:$0xff] %vm107_vm5, %v356_v59  ;;  %813 = vmatmul.msk.f32.gmra.mxu3 %vm107_vm5, %v616_v61 }
0x110a   :  { %v548_v62 = vpop.permute.xlu1 %547  ;;  %v618_v1 = vld [vmem:[#allocation3 + $0x18] sm:$0xff] }
0x110b   :  { %550 = vst.msk [vmem:[#allocation3 + $0x30] sm:$0xff] %vm107_vm5, %v548_v62  ;;  %814 = vmatmul.msk.f32.gmra.mxu3 %vm107_vm5, %v617_v0 }
0x1113   :  { %815 = vmatmul.msk.f32.gmra.mxu3 %vm107_vm5, %v618_v1 }
0x114f   :  { %v601_v4 = vpop.permute.xlu2 %600 }
0x1150   :  { %v603_v5 = vadd.f32 %v601_v4, %v593_v2 }
0x1152   :  { %886 = vtanh.f32 %v603_v5 }
0x1153   :  { %888 = vpow2.f32 %v713_v23 }
0x1158   :  { %v887_v6 = vpop.eup %886 }
0x1159   :  { %606 = vrot.lane.b32.xlu2 %v887_v6, %s921_s21  ;;  %v889_v32 = vpop.eup %888 }
0x1161   :  { %419 = vrot.lane.b32.xlu2 %v1032_v26, %s922_s22  ;;  %v621_v26 = vld [vmem:[#allocation3 + $0x30] sm:$0xff] }
0x1186   :  { %v668_v8 = vpop.f32.mrf.mxu3 }
0x1187   :  { %v1111_v9 = vadd.f32 %v1088_v42, %v668_v8 }
0x1189   :  { %691 = vmax.xlane.f32.xlu1 %v1111_v9 }
0x118e   :  { %v671_v3 = vpop.f32.mrf.mxu3 }
0x118f   :  { %v1120_v7 = vadd.f32 %v1088_v42, %v671_v3 }
0x1196   :  { %v674_v15 = vpop.f32.mrf.mxu3 }
0x1197   :  { %v1124_v16 = vadd.f32 %v1088_v42, %v674_v15 }
0x11b3   :  { %v607_v10 = vpop.permute.xlu2 %606 }
0x11b4   :  { %v609_v11 = vmul.f32 %v607_v10, %v590_v56 }
0x11b6   :  { %611 = vrot.lane.b32.xlu2 %v609_v11, %s922_s22 }
0x11bb   :  { %v420_v12 = vpop.permute.xlu2 %419 }
0x11bc   :  { %422 = vst.msk [vmem:[#allocation3 + $0x20] sm:$0xff] %vm107_vm5, %v420_v12 }
0x11c3   :  { %v619_v13 = vld [vmem:[#allocation3 + $0x20] sm:$0xff] }
0x11c4   :  { %816 = vmatmul.msk.f32.gmra.mxu3 %vm107_vm5, %v619_v13 }
0x11cc   :  { %817 = vmatmul.msk.f32.gmra.mxu3 %vm107_vm5, %v620_v14 }
0x11d4   :  { %818 = vmatmul.msk.f32.gmra.mxu3 %vm107_vm5, %v621_v26 }
0x11df   :  { %693 = vmax.xlane.f32.xlu2 %v1120_v7 }
0x11e7   :  { %695 = vmax.xlane.f32.xlu2 %v1124_v16 }
0x11fc   :  { %v692_v25 = vpop.xlane.xlu1 %691 }
0x11fd   :  { %v706_v29 = vsub.f32 %v1111_v9, %v692_v25 }
0x11ff   :  { %v715_v34 = vmul.f32 1.442695, %v706_v29 }
0x1201   :  { %890 = vpow2.f32 %v715_v34 }
0x1207   :  { %v891_v37 = vpop.eup %890 }
0x1210   :  { %v612_v17 = vpop.permute.xlu2 %611 }
0x1211   :  { %614 = vst.msk [vmem:[#allocation3 + $0x38] sm:$0xff] %vm107_vm5, %v612_v17 }
0x1218   :  { %v622_v18 = vld [vmem:[#allocation3 + $0x38] sm:$0xff] }
0x1219   :  { %819 = vmatmul.msk.f32.gmra.mxu3 %vm107_vm5, %v622_v18 }
0x1247   :  { %v677_v19 = vpop.f32.mrf.mxu3 }
0x1248   :  { %v1130_v21 = vadd.f32 %v1088_v42, %v677_v19 }
0x124a   :  { %697 = vmax.xlane.f32.xlu0 %v1130_v21 }
0x124f   :  { %v680_v24 = vpop.f32.mrf.mxu3 }
0x1250   :  { %v1135_v27 = vadd.f32 %v1088_v42, %v680_v24 }
0x1252   :  { %699 = vmax.xlane.f32.xlu1 %v1135_v27  ;;  %v1138_v28 = vpop.xlane.xlu2 %693 }
0x1253   :  { %v707_v39 = vsub.f32 %v1120_v7, %v1138_v28 }
0x1255   :  { %v717_v40 = vmul.f32 1.442695, %v707_v39 }
0x1257   :  { %v683_v30 = vpop.f32.mrf.mxu3 }
0x1258   :  { %v1142_v31 = vadd.f32 %v1088_v42, %v683_v30 }
0x125a   :  { %701 = vmax.xlane.f32.xlu2 %v1142_v31  ;;  %729 = vadd.xlane.f32.xlu1 %v889_v32  ;;  %v696_v33 = vpop.xlane.xlu2 %695 }
0x125b   :  { %v708_v35 = vsub.f32 %v1124_v16, %v696_v33 }
0x125d   :  { %v719_v36 = vmul.f32 1.442695, %v708_v35 }
0x125f   :  { %892 = vpow2.f32 %v719_v36 }
0x1260   :  { %894 = vpow2.f32 %v717_v40 }
0x1262   :  { %731 = vadd.xlane.f32.xlu2 %v891_v37 }
0x1265   :  { %v893_v38 = vpop.eup %892 }
0x1266   :  { %735 = vadd.xlane.f32.xlu1 %v893_v38  ;;  %v895_v45 = vpop.eup %894 }
0x129c   :  { %v686_v41 = vpop.f32.mrf.mxu3 }
0x129d   :  { %v1149_v43 = vadd.f32 %v1088_v42, %v686_v41 }
0x129f   :  { %703 = vmax.xlane.f32.xlu0 %v1149_v43 }
0x12a7   :  { %733 = vadd.xlane.f32.xlu0 %v895_v45 }
0x12bd   :  { %v698_v46 = vpop.xlane.xlu0 %697 }
0x12be   :  { %v709_v47 = vsub.f32 %v1130_v21, %v698_v46 }
0x12c0   :  { %v721_v48 = vmul.f32 1.442695, %v709_v47 }
0x12c2   :  { %896 = vpow2.f32 %v721_v48 }
0x12c5   :  { %v700_v49 = vpop.xlane.xlu1 %699 }
0x12c6   :  { %v710_v50 = vsub.f32 %v1135_v27, %v700_v49 }
0x12c8   :  { %v897_v51 = vpop.eup %896  ;;  %v723_v52 = vmul.f32 1.442695, %v710_v50 }
0x12c9   :  { %737 = vadd.xlane.f32.xlu2 %v897_v51 }
0x12ca   :  { %898 = vpow2.f32 %v723_v52 }
0x12cd   :  { %v730_v53 = vpop.xlane.xlu1 %729  ;;  %v702_v42 = vpop.xlane.xlu2 %701 }
0x12ce   :  { %900 = vlog2.f32 %v730_v53  ;;  %v711_v63 = vsub.f32 %v1142_v31, %v702_v42 }
0x12d0   :  { %v899_v54 = vpop.eup %898  ;;  %v725_v55 = vmul.f32 1.442695, %v711_v63 }
0x12d1   :  { %739 = vadd.xlane.f32.xlu0 %v899_v54 }
0x12d2   :  { %902 = vpow2.f32 %v725_v55 }
0x12d4   :  { %v901_v60 = vpop.eup %900 }
0x12d5   :  { %v746_v56 = vmul.f32 0.6931472, %v901_v60  ;;  %v732_v57 = vpop.xlane.xlu2 %731 }
0x12d6   :  { %904 = vlog2.f32 %v732_v57 }
0x12d7   :  { %v761_v58 = vadd.f32 %v746_v56, %v690_v20 }
0x12d8   :  { %v903_v59 = vpop.eup %902 }
0x12d9   :  { %v769_v61 = vsub.f32 %v1091_v44, %v761_v58  ;;  %v736_v62 = vpop.xlane.xlu1 %735  ;;  %741 = vadd.xlane.f32.xlu1 %v903_v59 }
0x12da   :  { %906 = vlog2.f32 %v736_v62 }
0x12db   :  { %777 = vst [vmem:[%s1191_s2] sm:$0xff] %v769_v61 }
0x12dc   :  { %v905_v0 = vpop.eup %904 }
0x12dd   :  { %v748_v1 = vmul.f32 0.6931472, %v905_v0 }
0x12df   :  { %v762_v2 = vadd.f32 %v748_v1, %v692_v25 }
0x12e0   :  { %v907_v4 = vpop.eup %906 }
0x12e1   :  { %v770_v5 = vsub.f32 %v1111_v9, %v762_v2  ;;  %v752_v6 = vmul.f32 0.6931472, %v907_v4 }
0x12e3   :  { %778 = vst [vmem:[%s1191_s2 + $0x8] sm:$0xff] %v770_v5  ;;  %v764_v8 = vadd.f32 %v752_v6, %v696_v33 }
0x12e5   :  { %v772_v44 = vsub.f32 %v1124_v16, %v764_v8 }
0x12e7   :  { %780 = vst [vmem:[%s1191_s2 + $0x18] sm:$0xff] %v772_v44 }
0x1312   :  { %v704_v10 = vpop.xlane.xlu0 %703 }
0x1313   :  { %v712_v11 = vsub.f32 %v1149_v43, %v704_v10 }
0x1315   :  { %v727_v12 = vmul.f32 1.442695, %v712_v11 }
0x1317   :  { %908 = vpow2.f32 %v727_v12 }
0x131a   :  { %v734_v13 = vpop.xlane.xlu0 %733 }
0x131b   :  { %910 = vlog2.f32 %v734_v13 }
0x131d   :  { %v909_v9 = vpop.eup %908 }
0x131e   :  { %743 = vadd.xlane.f32.xlu2 %v909_v9 }
0x1321   :  { %v911_v14 = vpop.eup %910 }
0x1322   :  { %v750_v26 = vmul.f32 0.6931472, %v911_v14 }
0x1324   :  { %v763_v3 = vadd.f32 %v750_v26, %v1138_v28 }
0x1326   :  { %v771_v15 = vsub.f32 %v1120_v7, %v763_v3 }
0x1328   :  { %779 = vst [vmem:[%s1191_s2 + $0x10] sm:$0xff] %v771_v15 }
0x133c   :  { %v738_v16 = vpop.xlane.xlu2 %737 }
0x133d   :  { %912 = vlog2.f32 %v738_v16 }
0x1343   :  { %v913_v17 = vpop.eup %912 }
0x1344   :  { %v754_v18 = vmul.f32 0.6931472, %v913_v17  ;;  %v740_v19 = vpop.xlane.xlu0 %739 }
0x1345   :  { %914 = vlog2.f32 %v740_v19 }
0x1346   :  { %v765_v20 = vadd.f32 %v754_v18, %v698_v46 }
0x1348   :  { %v773_v22 = vsub.f32 %v1130_v21, %v765_v20 }
0x134a   :  { %781 = vst [vmem:[%s1191_s2 + $0x20] sm:$0xff] %v773_v22 }
0x134b   :  { %v915_v23 = vpop.eup %914 }
0x134c   :  { %v756_v24 = vmul.f32 0.6931472, %v915_v23  ;;  %v742_v7 = vpop.xlane.xlu1 %741 }
0x134d   :  { %916 = vlog2.f32 %v742_v7 }
0x134e   :  { %v766_v25 = vadd.f32 %v756_v24, %v700_v49 }
0x1350   :  { %v774_v28 = vsub.f32 %v1135_v27, %v766_v25 }
0x1352   :  { %782 = vst [vmem:[%s1191_s2 + $0x28] sm:$0xff] %v774_v28 }
0x1353   :  { %v917_v29 = vpop.eup %916 }
0x1354   :  { %v758_v34 = vmul.f32 0.6931472, %v917_v29 }
0x1356   :  { %v767_v30 = vadd.f32 %v758_v34, %v702_v42 }
0x1358   :  { %v775_v21 = vsub.f32 %v1142_v31, %v767_v30 }
0x135a   :  { %783 = vst [vmem:[%s1191_s2 + $0x30] sm:$0xff] %v775_v21 }
0x1391   :  { %v744_v32 = vpop.xlane.xlu2 %743 }
0x1392   :  { %918 = vlog2.f32 %v744_v32 }
0x1398   :  { %v919_v33 = vpop.eup %918 }
0x1399   :  { %v760_v35 = vmul.f32 0.6931472, %v919_v33 }
0x139b   :  { %v768_v36 = vadd.f32 %v760_v35, %v704_v10 }
0x139d   :  { %v776_v27 = vsub.f32 %v1149_v43, %v768_v36 }
0x139f   :  { %784 = vst [vmem:[%s1191_s2 + $0x38] sm:$0xff] %v776_v27 }

</bundles_post_ra>
